<compile_context>
chip_gen: v7x
topology: tpu7x:2x2x1
jax: 0.10.0
libtpu: 0.0.40
codegen_flags: <defaults>
</compile_context>

<pallas_src>
import jax
import jax.numpy as jnp
from jax.experimental import pallas as pl
from jax.experimental.pallas import tpu as pltpu


# ---------------------------------------------------------------------------
# Kernels
# ---------------------------------------------------------------------------

def _attend(seq_ref, w_ref, b_ref, ctx_ref, attn_ref, mask_ref=None):
    """Shared body.

    seq_ref : (TB, S, H) VMEM, native dtype (bf16 stays bf16 for the MXU)
    w_ref   : (1, H)     VMEM   (nn.Linear(H, 1).weight as a row)
    b_ref   : (1, 1)     SMEM   (bias scalar)
    ctx_ref : (TB, H)    VMEM out
    attn_ref: (TB, S)    VMEM out (f32)
    mask_ref: (TB, S)    VMEM int32 (0 == masked out) or None
    """
    seq = seq_ref[...]                                   # (TB, S, H) native dtype
    tb, _, h = seq.shape
    w = w_ref[...].astype(seq.dtype)                     # (1, H)
    w_b = jnp.broadcast_to(w[None, :, :], (tb, 1, h))    # (TB, 1, H)
    bias = b_ref[0, 0]

    # attention_scores = Linear(seq).squeeze(-1)
    # Batched MXU contraction (M=1, K=H), f32 accumulation -> (TB, S) f32.
    scores = jnp.einsum(
        "bqh,bsh->bqs", w_b, seq, preferred_element_type=jnp.float32
    )[:, 0, :] + bias                                    # (TB, S) f32

    # masked_fill(mask == 0, -1e9) -- integer compare, no f32 mask traffic.
    if mask_ref is not None:
        scores = jnp.where(mask_ref[...] == 0, jnp.float32(-1e9), scores)

    # numerically stable softmax over the sequence (lane) axis.
    m = jnp.max(scores, axis=-1, keepdims=True)          # (TB, 1)
    e = jnp.exp(scores - m)                              # (TB, S)
    denom = jnp.sum(e, axis=-1, keepdims=True)           # (TB, 1)
    # exact reciprocal keeps the 1e-5 tolerance (approx=True is only ~1e-3 and
    # the kernel is HBM-bound, so the exact divide is free filler).
    weights = e * pl.reciprocal(denom, approx=False)     # (TB, S) f32

    # context = bmm(weights.unsqueeze(1), seq).squeeze(1)
    # Batched MXU contraction (M=1, K=S, N=H) on the native-dtype tile.
    ctx = jnp.einsum(
        "bqs,bsh->bqh",
        weights[:, None, :].astype(seq.dtype), seq,
        preferred_element_type=jnp.float32,
    )[:, 0, :]                                           # (TB, H) f32

    ctx_ref[...] = ctx.astype(ctx_ref.dtype)
    attn_ref[...] = weights.astype(attn_ref.dtype)


def _self_attention_kernel_masked(seq_ref, mask_ref, w_ref, b_ref, ctx_ref, attn_ref):
    _attend(seq_ref, w_ref, b_ref, ctx_ref, attn_ref, mask_ref=mask_ref)


def _self_attention_kernel_nomask(seq_ref, w_ref, b_ref, ctx_ref, attn_ref):
    _attend(seq_ref, w_ref, b_ref, ctx_ref, attn_ref, mask_ref=None)


# ---------------------------------------------------------------------------
# Tiling / budgets
# ---------------------------------------------------------------------------

def _round_up(x, m):
    return ((x + m - 1) // m) * m


def _tpu_budgets():
    """(working-set budget, vmem_limit_bytes, min grid steps) per generation."""
    cap = None
    try:
        cap = getattr(pltpu.get_tpu_info(), "vmem_capacity_bytes", None)
    except Exception:
        cap = None
    if cap is None:
        cap = 64 << 20                                   # conservative default
    if cap >= (96 << 20):
        # v5e / v6e class: 128 MiB physical VMEM (scoped default 16/32 MiB).
        return 48 << 20, 64 << 20, 2
    # v7x class: 64 MiB physical, 2 TCs -> cap working set ~44 MiB, >=4 steps.
    return 28 << 20, 44 << 20, 4


def _pick_batch_block(B, S, H, itemsize, ws_budget_bytes, min_steps):
    """Pick (TB, B_pad).

    Budgets on the padded VMEM layout of the full double-buffered working set
    (seq in, mask in, attn/ctx out, f32 intermediates).  TB must be a multiple
    of 8 (sublane rule for the 2-D (TB,S)/(TB,H) blocks) or equal the batch.
    """
    sub = 8 * max(1, 4 // itemsize)                      # f32->8, bf16->16, i8->32
    seq_row = _round_up(S, sub) * _round_up(H, 128) * itemsize  # padded (S,H) plane
    s_lane_row = _round_up(S, 128) * 4                   # one padded f32/i32 (.,S) row
    h_lane_row = _round_up(H, 128) * 4                   # one padded f32 (.,H) row
    # double-buffered pipelined operands: seq in, mask in, attn out, ctx out
    per_row = 2 * (seq_row + 2 * s_lane_row + h_lane_row)
    # + in-kernel f32 intermediates (scores/exp/weights, padded-M matmul tiles)
    per_row += 6 * s_lane_row + 2 * h_lane_row

    max_rows = max(1, int(ws_budget_bytes) // per_row)
    max_rows = min(max_rows, 256)                        # bound per-step matmul unroll

    if B < 16:
        # cannot form >= 2 blocks that satisfy the multiple-of-8 sublane rule
        if B <= max_rows:
            return B, B                                  # tiny batch, single block
        return 8, _round_up(B, 8)                        # pad batch, 8-row blocks
    tb = min(max_rows, max(8, B // min_steps))
    tb = max(8, (tb // 8) * 8)
    return tb, _round_up(B, tb)


# ---------------------------------------------------------------------------
# Wrapper
# ---------------------------------------------------------------------------

def self_attention(sequence_output, w, b, mask=None):
    """Pallas implementation of SelfAttention.forward.

    sequence_output: (B, S, H)
    w              : (1, H)  (nn.Linear(hidden_dim, 1).weight)
    b              : (1,)    (nn.Linear(hidden_dim, 1).bias)
    mask           : (B, S) or None

    Returns (context (B, H), attention_weights (B, S) in f32).
    """
    B, S, H = sequence_output.shape
    dtype = sequence_output.dtype
    itemsize = jnp.dtype(dtype).itemsize

    ws_budget, vmem_limit, min_steps = _tpu_budgets()
    TB, B_pad = _pick_batch_block(B, S, H, itemsize, ws_budget, min_steps)

    seq = sequence_output
    mask_i = None if mask is None else jnp.asarray(mask, jnp.int32).reshape(B, S)
    if B_pad != B:
        seq = jnp.pad(seq, ((0, B_pad - B), (0, 0), (0, 0)))
        if mask_i is not None:
            mask_i = jnp.pad(mask_i, ((0, B_pad - B), (0, 0)), constant_values=1)
    grid = (B_pad // TB,)

    w_row = jnp.asarray(w, jnp.float32).reshape(1, H)    # (1, H)
    b_smem = jnp.asarray(b, jnp.float32).reshape(1, 1)   # (1, 1) -> SMEM

    out_shape = (
        jax.ShapeDtypeStruct((B_pad, H), dtype),         # context
        jax.ShapeDtypeStruct((B_pad, S), jnp.float32),   # attention weights
    )
    seq_spec = pl.BlockSpec((TB, S, H), lambda i: (i, 0, 0))
    w_spec = pl.BlockSpec((1, H), lambda i: (0, 0))
    b_spec = pl.BlockSpec(memory_space=pltpu.MemorySpace.SMEM)
    out_specs = [
        pl.BlockSpec((TB, H), lambda i: (i, 0)),
        pl.BlockSpec((TB, S), lambda i: (i, 0)),
    ]
    cparams = pltpu.CompilerParams(
        dimension_semantics=("parallel",),
        vmem_limit_bytes=vmem_limit,
    )

    if mask_i is None:
        ctx, attn = pl.pallas_call(
            _self_attention_kernel_nomask,
            out_shape=out_shape,
            grid_spec=pltpu.PrefetchScalarGridSpec(
                num_scalar_prefetch=0,
                grid=grid,
                in_specs=[seq_spec, w_spec, b_spec],
                out_specs=out_specs,
            ),
            compiler_params=cparams,
        )(seq, w_row, b_smem)
    else:
        mask_spec = pl.BlockSpec((TB, S), lambda i: (i, 0))
        ctx, attn = pl.pallas_call(
            _self_attention_kernel_masked,
            out_shape=out_shape,
            grid_spec=pltpu.PrefetchScalarGridSpec(
                num_scalar_prefetch=0,
                grid=grid,
                in_specs=[seq_spec, mask_spec, w_spec, b_spec],
                out_specs=out_specs,
            ),
            compiler_params=cparams,
        )(seq, mask_i, w_row, b_smem)

    if B_pad != B:
        ctx, attn = ctx[:B], attn[:B]
    return ctx, attn


# ---------------------------------------------------------------------------
# Reference + test
# ---------------------------------------------------------------------------

def _reference(sequence_output, w, b, mask=None):
    """Plain-JAX reference mirroring the PyTorch forward."""
    scores = jnp.einsum("bsh,oh->bso", sequence_output, w)[..., 0] + b[0]  # (B, S)
    if mask is not None:
        scores = jnp.where(mask == 0, -1e9, scores)
    weights = jax.nn.softmax(scores, axis=-1)
    context = jnp.einsum("bs,bsh->bh", weights, sequence_output)
    return context, weights


if __name__ == "__main__":
    B, S, H = 2, 8, 32

    key = jax.random.PRNGKey(0)
    k_seq, k_w, k_b, k_mask = jax.random.split(key, 4)

    sequence_output = jax.random.normal(k_seq, (B, S, H), dtype=jnp.float32)
    # nn.Linear(hidden_dim, 1): weight (1, H), bias (1,)
    w = jax.random.normal(k_w, (1, H), dtype=jnp.float32) * 0.1
    b = jax.random.normal(k_b, (1,), dtype=jnp.float32) * 0.1
    # padding mask: 1 = keep, 0 = masked (last two positions of batch 1 padded)
    mask = jnp.ones((B, S), dtype=jnp.int32).at[1, -2:].set(0)

    # masked path
    context, attn_weights = self_attention(sequence_output, w, b, mask)
    context = jax.block_until_ready(context)
    attn_weights = jax.block_until_ready(attn_weights)
    ctx_ref, attn_ref = _reference(sequence_output, w, b, mask)
    assert jnp.allclose(context, ctx_ref, atol=1e-5, rtol=1e-5)
    assert jnp.allclose(attn_weights, attn_ref, atol=1e-5, rtol=1e-5)

    # no-mask path (specialized kernel: no synthetic ones-mask HBM traffic)
    context_nm, attn_nm = self_attention(sequence_output, w, b, None)
    context_nm = jax.block_until_ready(context_nm)
    attn_nm = jax.block_until_ready(attn_nm)
    ctx_ref_nm, attn_ref_nm = _reference(sequence_output, w, b, None)
    assert jnp.allclose(context_nm, ctx_ref_nm, atol=1e-5, rtol=1e-5)
    assert jnp.allclose(attn_nm, attn_ref_nm, atol=1e-5, rtol=1e-5)

    print("KERNEL_OK")
</pallas_src>

<mosaic_0001>
module attributes {stable_mosaic.version = 11 : i64} {
  func.func @_self_attention_kernel_masked(%arg0: i32, %arg1: memref<2x8x32xf32, #tpu.memory_space<vmem>>, %arg2: memref<2x8xi32, #tpu.memory_space<vmem>>, %arg3: memref<1x32xf32, #tpu.memory_space<vmem>>, %arg4: memref<1x1xf32, #tpu.memory_space<smem>>, %arg5: memref<2x32xf32, #tpu.memory_space<vmem>>, %arg6: memref<2x8xf32, #tpu.memory_space<vmem>>) attributes {dimension_semantics = [#tpu.dimension_semantics<parallel>], iteration_bounds = array<i64: 1>, scalar_prefetch = 0 : i64, scratch_operands = 0 : i64, tpu.core_type = #tpu.core_type<tc>, window_params = [{transform_indices = @transform_0, window_bounds = array<i64: 2, 8, 32>}, {transform_indices = @transform_1, window_bounds = array<i64: 2, 8>}, {pipeline_mode = #tpu.pipeline_mode<synchronous>, transform_indices = @transform_2, window_bounds = array<i64: 1, 32>}, {transform_indices = @transform_3, window_bounds = array<i64: 1, 1>}, {transform_indices = @transform_4, window_bounds = array<i64: 2, 32>}, {transform_indices = @transform_5, window_bounds = array<i64: 2, 8>}]} {
    %c0 = arith.constant 0 : index
    %c0_0 = arith.constant 0 : index
    %c0_1 = arith.constant 0 : index
    %0 = vector.load %arg1[%c0, %c0_0, %c0_1] : memref<2x8x32xf32, #tpu.memory_space<vmem>>, vector<2x8x32xf32>
    %c0_2 = arith.constant 0 : index
    %c0_3 = arith.constant 0 : index
    %1 = vector.load %arg3[%c0_2, %c0_3] : memref<1x32xf32, #tpu.memory_space<vmem>>, vector<1x32xf32>
    %2 = vector.shape_cast %1 : vector<1x32xf32> to vector<1x1x32xf32>
    %3 = vector.shape_cast %2 : vector<1x1x32xf32> to vector<1x1x32xf32>
    %4 = vector.broadcast %3 : vector<1x1x32xf32> to vector<2x1x32xf32>
    %c0_4 = arith.constant 0 : index
    %c0_5 = arith.constant 0 : index
    %5 = memref.load %arg4[%c0_4, %c0_5] : memref<1x1xf32, #tpu.memory_space<smem>>
    "tpu.trace_start"() <{level = 10 : i32, message = "bqh,bsh->bqs"}> : () -> ()
    %cst = arith.constant dense<0.000000e+00> : vector<2x1x8xf32>
    %6 = tpu.matmul %4, %0, %cst {dimension_numbers = #tpu.dot_dimension_numbers<[2], [2], [1], [1], [0, 0, 0, 1, 1, 1], [0], [0]>} : vector<2x1x32xf32>, vector<2x8x32xf32>, vector<2x1x8xf32> -> vector<2x1x8xf32>
    "tpu.trace_stop"() : () -> ()
    %7 = vector.shape_cast %6 : vector<2x1x8xf32> to vector<2x8xf32>
    %8 = vector.broadcast %5 : f32 to vector<2x8xf32>
    %9 = arith.addf %7, %8 : vector<2x8xf32>
    %c0_6 = arith.constant 0 : index
    %c0_7 = arith.constant 0 : index
    %10 = vector.load %arg2[%c0_6, %c0_7] : memref<2x8xi32, #tpu.memory_space<vmem>>, vector<2x8xi32>
    %c0_i32 = arith.constant 0 : i32
    %11 = vector.broadcast %c0_i32 : i32 to vector<2x8xi32>
    %12 = arith.cmpi eq, %10, %11 : vector<2x8xi32>
    %cst_8 = arith.constant -1.000000e+09 : f32
    %13 = vector.broadcast %cst_8 : f32 to vector<2x8xf32>
    %14 = arith.select %12, %13, %9 : vector<2x8xi1>, vector<2x8xf32>
    %cst_9 = arith.constant dense<0xFF800000> : vector<2xf32>
    %15 = vector.multi_reduction <maximumf>, %14, %cst_9 [1] : vector<2x8xf32> to vector<2xf32>
    %16 = vector.shape_cast %15 : vector<2xf32> to vector<2x1xf32>
    %17 = vector.broadcast %16 : vector<2x1xf32> to vector<2x8xf32>
    %18 = arith.subf %14, %17 : vector<2x8xf32>
    %19 = math.exp %18 : vector<2x8xf32>
    %cst_10 = arith.constant dense<0.000000e+00> : vector<2xf32>
    %20 = vector.multi_reduction <add>, %19, %cst_10 [1] : vector<2x8xf32> to vector<2xf32>
    %21 = vector.shape_cast %20 : vector<2xf32> to vector<2x1xf32>
    %22 = tpu.reciprocal %21 : vector<2x1xf32> -> vector<2x1xf32>
    %23 = vector.broadcast %22 : vector<2x1xf32> to vector<2x8xf32>
    %24 = arith.mulf %19, %23 : vector<2x8xf32>
    %25 = vector.shape_cast %24 : vector<2x8xf32> to vector<2x1x8xf32>
    "tpu.trace_start"() <{level = 10 : i32, message = "bqs,bsh->bqh"}> : () -> ()
    %cst_11 = arith.constant dense<0.000000e+00> : vector<2x1x32xf32>
    %26 = tpu.matmul %25, %0, %cst_11 {dimension_numbers = #tpu.dot_dimension_numbers<[2], [1], [1], [2], [0, 0, 0, 1, 1, 2], [0], [0]>} : vector<2x1x8xf32>, vector<2x8x32xf32>, vector<2x1x32xf32> -> vector<2x1x32xf32>
    "tpu.trace_stop"() : () -> ()
    %27 = vector.shape_cast %26 : vector<2x1x32xf32> to vector<2x32xf32>
    %c0_12 = arith.constant 0 : index
    %c0_13 = arith.constant 0 : index
    %28 = vector.load %arg5[%c0_12, %c0_13] : memref<2x32xf32, #tpu.memory_space<vmem>>, vector<2x32xf32>
    tpu.vector_store %arg5[%c0_12, %c0_13], %27 {strides = array<i32>} : memref<2x32xf32, #tpu.memory_space<vmem>>, vector<2x32xf32>,
    %c0_14 = arith.constant 0 : index
    %c0_15 = arith.constant 0 : index
    %29 = vector.load %arg6[%c0_14, %c0_15] : memref<2x8xf32, #tpu.memory_space<vmem>>, vector<2x8xf32>
    tpu.vector_store %arg6[%c0_14, %c0_15], %24 {strides = array<i32>} : memref<2x8xf32, #tpu.memory_space<vmem>>, vector<2x8xf32>,
    return
  }
  func.func @transform_0(%arg0: i32) -> (i32, i32, i32) {
    %c0_i32 = arith.constant 0 : i32
    %c0_i32_0 = arith.constant 0 : i32
    %c0_i32_1 = arith.constant 0 : i32
    return %arg0, %c0_i32, %c0_i32_0 : i32, i32, i32
  }
  func.func @transform_1(%arg0: i32) -> (i32, i32) {
    %c0_i32 = arith.constant 0 : i32
    %c0_i32_0 = arith.constant 0 : i32
    return %arg0, %c0_i32 : i32, i32
  }
  func.func @transform_2(%arg0: i32) -> (i32, i32) {
    %c0_i32 = arith.constant 0 : i32
    %c0_i32_0 = arith.constant 0 : i32
    %c0_i32_1 = arith.constant 0 : i32
    return %c0_i32, %c0_i32_0 : i32, i32
  }
  func.func @transform_3(%arg0: i32) -> (i32, i32) {
    %c0_i32 = arith.constant 0 : i32
    %c0_i32_0 = arith.constant 0 : i32
    %c0_i32_1 = arith.constant 0 : i32
    return %c0_i32, %c0_i32_0 : i32, i32
  }
  func.func @transform_4(%arg0: i32) -> (i32, i32) {
    %c0_i32 = arith.constant 0 : i32
    %c0_i32_0 = arith.constant 0 : i32
    return %arg0, %c0_i32 : i32, i32
  }
  func.func @transform_5(%arg0: i32) -> (i32, i32) {
    %c0_i32 = arith.constant 0 : i32
    %c0_i32_0 = arith.constant 0 : i32
    return %arg0, %c0_i32 : i32, i32
  }
}

</mosaic_0001>

<bundles_post_ra>
// kernel: tpu_custom_call.1
= control target key start
LH: loop header
LB: loop body
LE: loop exit
PB: predicated region body
PF: predicated region fallthrough
CT: control target
= control target key end

     0   :  { %12 = vsyncpa [#allocation4], 0  ;;  %s629_s0 = inlined_call_operand.hbm [shape: f32[2,8,32], index: 0, kind: input, shape index: {}]   ;;  %s630_s1 = inlined_call_operand.vmem [shape: s32[2,8], index: 1, kind: input, shape index: {}]   ;;  %s631_s2 = inlined_call_operand.vmem [shape: f32[1,32], index: 2, kind: input, shape index: {}]   ;;  %s632_s3 = inlined_call_operand.<no memory space> [shape: f32[1,1], index: 3, kind: input, shape index: {}]   ;;  %s633_s4 = inlined_call_operand.hbm [shape: f32[2,32], index: 4, kind: output, shape index: {0}]   ;;  %s634_s5 = inlined_call_operand.hbm [shape: f32[2,8], index: 5, kind: output, shape index: {1}]  }
   0x1   :  { %13 = vsyncpa [#allocation5], 0 }
   0x2   :  { %14 = vsyncpa [#allocation8], 0  ;;  %s537_s18 = smov [#allocation3]   ;;  %s465_s22 = scalar_lea.hbm %s629_s0, 256 }
   0x3   :  { %s20_s19 = sshll.u32 %s537_s18, 4  ;;  %p466_p0 = scmp.ne.s32.totalorder %s629_s0, %s465_s22  ;;  %s21_s19 = int_to_ptr.vmem [resolvable:$true] %s20_s19 }
   0x4   :  { %p469_p1 = scmp.lt.u32.totalorder %s465_s22, %s629_s0 }
   0x6   :  { %p471_p2 = pnand %p469_p1, %p466_p0 }
   0x8   :  { %474 = shalt.err (!%p471_p2)
}
   0x9   :  { %s475_s27 = scalar_lea.vmem %s21_s19, 256  ;;  %p480_p4 = scmp.lt.s32.totalorder %s21_s19, %s21_s19 }
   0xa   :  { %p476_p3 = scmp.ne.s32.totalorder %s21_s19, %s475_s27  ;;  %p481_p5 = scmp.lt.s32.totalorder %s475_s27, %s475_s27 }
   0xc   :  { %p482_p6 = por %p481_p5, %p480_p4 }
   0xe   :  { %p483_p7 = pnand %p482_p6, %p476_p3 }
  0x10   :  { %486 = shalt.err (!%p483_p7)
}
  0x11   :  { %s538_s28 = smov 128   ;;  %s539_s29 = smov 8  }
  0x12   :  { %26 = dma.hbm_to_vmem [thread:$0]  %s629_s0, 256, %s21_s19, [#allocation4], %s538_s28, %s538_s28, %s539_s29  }
  0x13   :  { %531 = dma.done.wait [#allocation4], 256  }
  0x14   :  { %532 = vsyncadd [#allocation4], 4294967040  ;;  %v540_v0 = vmov 0.0   ;;  %vm541_vm0 = vmmov 0   ;;  %vm40_vm1 = vcmask 261120   ;;  %v37_v1 = vld [vmem:[#allocation3 + $0x8] sm:$0xff]  ;;  %v190_v4 = vstv %s632_s3 }
  0x15   :  { %438 = vmatprep.subr.mxu1 %v540_v0  ;;  %433 = vmatprep.subr.mxu0 %v540_v0  ;;  %v36_v2 = vld [vmem:[#allocation3] sm:$0xff]  ;;  %vm198_vm2 = vcmask 1041409   ;;  %vm202_vm4 = vcmask 58368   ;;  %v542_v22 = vmov 1966171168   ;;  %v218_v24 = vlaneseq }
  0x16   :  { %440 = vmatprep.mubr.msk.f32.mxu1 %vm541_vm0, %v540_v0  ;;  %435 = vmatprep.mubr.msk.f32.mxu0 %vm541_vm0, %v540_v0  ;;  %v38_v3 = vld [vmem:[%s631_s2] sm:$0x1]  ;;  %v216_v23 = vunpack.c.l.s4 %v542_v22  ;;  %vm237_vm5 = vcmask 64512  }
  0x17   :  { %439 = vmatpush3.xpose.msk.msra.mxu1 %vm40_vm1, %v37_v1  ;;  %434 = vmatpush3.xpose.msk.msra.mxu0 %vm40_vm1, %v36_v2  ;;  %v193_v7 = vld [vmem:[%s630_s1] sm:$0x3]  ;;  %v219_v26 = vshrl.u32 %v218_v24, 7  ;;  %s543_s1 = smov [#allocation7]  }
  0x18   :  { %448 = vmatprep.subr.mxu1 %v540_v0  ;;  %443 = vmatprep.subr.mxu0 %v540_v0  ;;  %vm194_vm3 = vcmp.eq.s32.totalorder %v193_v7, 0  ;;  %v217_v25 = vunpack.c.0.s8 %v216_v23  ;;  %s406_s2 = sshll.u32 %s543_s1, 4  ;;  %s407_s2 = int_to_ptr.vmem [resolvable:$true] %s406_s2 }
  0x19   :  { %s487_s3 = scalar_lea.vmem %s407_s2, 32  ;;  %p492_p9 = scmp.lt.s32.totalorder %s407_s2, %s407_s2 }
  0x1a   :  { %441 = vmatmul.mubr.msk.f32.vlgmr.msra.gmra.mrb[0].mxu1 %vm40_vm1, %v38_v3  ;;  %436 = vmatmul.mubr.msk.f32.vlgmr.msra.gmra.mrb[0].mxu0 %vm40_vm1, %v38_v3  ;;  %v220_v27 = vsub.s32 %v217_v25, %v219_v26  ;;  %p488_p8 = scmp.ne.s32.totalorder %s407_s2, %s487_s3  ;;  %p493_p10 = scmp.lt.s32.totalorder %s487_s3, %s487_s3 }
  0x1b   :  { %449 = vmatpush3.msra.mxu1 %v37_v1  ;;  %444 = vmatpush3.msra.mxu0 %v36_v2 }
  0x1c   :  { %445 = vmatprep.mubr.msk.f32.mxu0 %vm541_vm0, %v540_v0  ;;  %450 = vmatprep.mubr.msk.f32.mxu1 %vm541_vm0, %v540_v0  ;;  %p494_p11 = por %p493_p10, %p492_p9 }
  0x1e   :  { %p495_p12 = pnand %p494_p11, %p488_p8 }
  0xed   :  { %v186_v5 = vpop.f32.mrb[0].mxu1  ;;  %v113_v6 = vpop.f32.mrb[0].mxu0 }
  0xee   :  { %v192_v8 = vadd.f32 %v190_v4, %v186_v5  ;;  %v191_v9 = vadd.f32 %v190_v4, %v113_v6  ;;  %v442_v10 = vpop.f32.mrb[1].mxu1  ;;  %v437_v11 = vpop.f32.mrb[1].mxu0 }
  0xf0   :  { %v197_v12 = vrot.slane %v192_v8, 7 }
  0xf2   :  { %v199_v13 = vsel %vm198_vm2, %v197_v12, %v191_v9 }
  0xf3   :  { %v201_v14 = vsel %vm194_vm3, -1e+09, %v199_v13 }
  0xf4   :  { %v203_v15 = vsel %vm202_vm4, %v201_v14, -inf }
  0xf5   :  { %204 = vmax.xlane.f32.xlu0 %v203_v15 }
 0x182   :  { %v205_v16 = vpop.xlane.xlu0 %204 }
 0x183   :  { %v206_v17 = vsub.f32 %v201_v14, %v205_v16 }
 0x185   :  { %v207_v18 = vmul.f32 1.442695, %v206_v17 }
 0x187   :  { %461 = vpow2.f32 %v207_v18 }
 0x191   :  { %v462_v19 = vpop.eup %461 }
 0x192   :  { %v209_v20 = vsel %vm202_vm4, %v462_v19, 0.0 }
 0x193   :  { %210 = vadd.xlane.f32.xlu0 %v209_v20 }
 0x220   :  { %v211_v21 = vpop.xlane.xlu0 %210 }
 0x221   :  { %463 = vrcp.f32 %v211_v21 }
 0x22b   :  { %v464_v28 = vpop.eup %463 }
 0x22c   :  { %v213_v29 = vmul.f32 %v464_v28, %v462_v19 }
 0x22e   :  { %v221_v30 = vrot.slane %v213_v29, %v220_v27  ;;  %389 = vst.msk [vmem:[#allocation7] sm:$0x3] %vm202_vm4, %v213_v29 }
 0x230   :  { %v229_v31 = vrot.slane %v221_v30, %v220_v27  ;;  %v222_v32 = vcombine.high %v221_v30, %v221_v30 }
 0x232   :  { %446 = vmatmul.mubr.msk.f32.vlgmr.msra.gmra.mrb[2].mxu0 %vm237_vm5, %v229_v31  ;;  %v236_v33 = vrot.slane %v222_v32, %v220_v27 }
 0x234   :  { %451 = vmatmul.mubr.msk.f32.vlgmr.msra.gmra.mrb[2].mxu1 %vm237_vm5, %v236_v33 }
 0x235   :  { %498 = shalt.err (!%p495_p12)
}
 0x236   :  { %s499_s14 = scalar_lea.hbm %s634_s5, 32 }
 0x237   :  { %p500_p13 = scmp.ne.s32.totalorder %s634_s5, %s499_s14  ;;  %p503_p0 = scmp.lt.u32.totalorder %s499_s14, %s634_s5 }
 0x239   :  { %p505_p1 = pnand %p503_p0, %p500_p13 }
 0x23b   :  { %508 = shalt.err (!%p505_p1)
}
 0x23c   :  { %409 = dma.vmem_to_hbm [thread:$0]  %s407_s2, 32, %s634_s5, [#allocation8]   ;;  %vm387_vm6 = vcmask 254976  }
 0x23d   :  { %s544_s21 = smov [#allocation6]  }
 0x23e   :  { %s396_s22 = sshll.u32 %s544_s21, 4  ;;  %s397_s22 = int_to_ptr.vmem [resolvable:$true] %s396_s22 }
 0x23f   :  { %s509_s23 = scalar_lea.vmem %s397_s22, 32  ;;  %p514_p3 = scmp.lt.s32.totalorder %s397_s22, %s397_s22 }
 0x240   :  { %p510_p2 = scmp.ne.s32.totalorder %s397_s22, %s509_s23  ;;  %p515_p4 = scmp.lt.s32.totalorder %s509_s23, %s509_s23 }
 0x242   :  { %p516_p5 = por %p515_p4, %p514_p3 }
 0x244   :  { %p517_p6 = pnand %p516_p5, %p510_p2 }
 0x305   :  { %v306_v34 = vpop.f32.mrb[2].mxu0 }
 0x306   :  { %v447_v35 = vpop.f32.mrb[3].mxu0 }
 0x307   :  { %v378_v36 = vpop.f32.mrb[2].mxu1 }
 0x308   :  { %v384_v37 = vrot.slane %v378_v36, 7  ;;  %v452_v38 = vpop.f32.mrb[3].mxu1 }
 0x30a   :  { %v385_v39 = vsel %vm198_vm2, %v384_v37, %v306_v34 }
 0x30b   :  { %388 = vst.msk [vmem:[#allocation6] sm:$0x3] %vm387_vm6, %v385_v39 }
 0x30c   :  { %520 = shalt.err (!%p517_p6)
}
 0x30d   :  { %s521_s25 = scalar_lea.hbm %s633_s4, 32 }
 0x30e   :  { %p522_p7 = scmp.ne.s32.totalorder %s633_s4, %s521_s25  ;;  %p525_p8 = scmp.lt.u32.totalorder %s521_s25, %s633_s4 }
 0x310   :  { %p527_p9 = pnand %p525_p8, %p522_p7 }
 0x312   :  { %530 = shalt.err (!%p527_p9)
}
 0x313   :  { %399 = dma.vmem_to_hbm [thread:$0]  %s397_s22, 32, %s633_s4, [#allocation5]  }
 0x314   :  { %533 = dma.done.wait [#allocation5], 32  }
 0x315   :  { %534 = vsyncadd [#allocation5], 4294967264 }
 0x316   :  { %535 = dma.done.wait [#allocation8], 32  }
 0x317   :  { %536 = vsyncadd [#allocation8], 4294967264 }
 0x318   :  { %416 = vsyncpa [#allocation4], 1 }
 0x319   :  { %417 = vsyncpa [#allocation5], 1 }
 0x31a   :  { %418 = vsyncpa [#allocation8], 1 }

</bundles_post_ra>
